<compile_context>
chip_gen: v7x
topology: tpu7x:2x2x1
jax: 0.10.0
libtpu: 0.0.40
codegen_flags: <defaults>
</compile_context>

<pallas_src>
import jax
import jax.numpy as jnp
from jax.experimental import pallas as pl
from jax.experimental.pallas import tpu as pltpu


_LANE = 128


def _sublane_unit(dtype):
    """Sublane row unit: 8 for 4-byte dtypes, 16 for bf16, 32 for int8/fp8."""
    itemsize = jnp.dtype(dtype).itemsize
    return 8 * max(1, 4 // itemsize)


def _round_up(x, m):
    return ((x + m - 1) // m) * m


def _pick_tile(dim, unit, max_tile):
    """Largest t <= max_tile with t % unit == 0 and dim % t == 0 (requires dim % unit == 0)."""
    assert dim % unit == 0
    t = max(min((max_tile // unit) * unit, dim), unit)
    while dim % t != 0:
        t -= unit
    return t


def _choose_tiles(R, L, unit_r, itemsize, row_tile_max, lane_tile_max):
    tile_l = _pick_tile(L, _LANE, lane_tile_max)
    tile_r = _pick_tile(R, unit_r, row_tile_max)
    # Keep at least 2 grid programs (v7x shards "parallel" axes across its 2 TCs
    # and the pipeline needs steps to overlap) by splitting the row axis, but
    # never shrink a tile below ~2 MiB unless the whole problem is tiny anyway.
    min_tile_bytes = min(2 << 20, (R * L * itemsize) // 2)
    while ((R // tile_r) * (L // tile_l) < 2
           and tile_r // 2 >= unit_r
           and R % (tile_r // 2) == 0
           and (tile_r // 2) * tile_l * itemsize >= min_tile_bytes):
        tile_r //= 2
    return tile_r, tile_l


def _gate_kernel(p_ref, w1_ref, w2_ref, g_ref):
    """pooled(4x4) -> Conv4x4 (one matmul) -> Swish -> Conv1x1 -> Sigmoid, all in f32."""
    p = p_ref[...].astype(jnp.float32)                           # (B, 16*C_in), lane-dense
    y1 = jnp.dot(p, w1_ref[...].astype(jnp.float32),
                 preferred_element_type=jnp.float32)             # 4x4 conv == one matmul
    y1 = y1 * jax.nn.sigmoid(y1)                                 # Swish
    y2 = jnp.dot(y1, w2_ref[...].astype(jnp.float32),
                 preferred_element_type=jnp.float32)             # 1x1 conv (bias=False per spec)
    g_ref[...] = jax.nn.sigmoid(y2)                              # keep gate in f32


def _scale_kernel(gate_ref, xb_ref, o_ref):
    """Tiled broadcast multiply: (tile_r, 1) f32 gate over a (tile_r, tile_l) feat_big tile."""
    o_ref[...] = (xb_ref[...].astype(jnp.float32) * gate_ref[...]).astype(o_ref.dtype)


def se_block(feat_small, feat_big, w1, w2, *,
             row_tile_max=512, lane_tile_max=2048,
             vmem_limit_bytes=48 * 1024 * 1024, in_place=False):
    """feat_small: (B, C_in, Hs, Ws); feat_big: (B, C_out, Hb, Wb)
    w1: (C_out, C_in, 4, 4), w2: (C_out, C_out, 1, 1)   (PyTorch conv layouts)."""
    B, C_in, Hs, Ws = feat_small.shape
    Bb, C_out, Hb, Wb = feat_big.shape
    assert B == Bb
    assert w1.shape == (C_out, C_in, 4, 4)
    assert w2.shape[:2] == (C_out, C_out)
    # TODO(synk): true AdaptiveAvgPool2d(4) uses variable-size bins when Hs/Ws are
    # not divisible by 4; only the divisible case is implemented here.
    assert Hs % 4 == 0 and Ws % 4 == 0

    # ---------- tiny gate path ----------
    # Average pool to 4x4 in the wrapper (off the critical path, tiny input),
    # flattened (c, i, j)-major to match w1 flattened as (C_out, C_in*16).
    pooled = feat_small.astype(jnp.float32).reshape(B, C_in, 4, Hs // 4, 4, Ws // 4)
    pooled = pooled.mean(axis=(3, 5)).reshape(B, C_in * 16)            # (B, 16*C_in)
    w1_flat = jnp.transpose(w1.reshape(C_out, C_in * 16), (1, 0))      # (16*C_in, C_out)
    w2_flat = jnp.transpose(w2.reshape(C_out, C_out), (1, 0))          # (C_out, C_out)

    gate = pl.pallas_call(
        _gate_kernel,
        out_shape=jax.ShapeDtypeStruct((B, C_out), jnp.float32),
        grid=(1,),
        in_specs=[
            pl.BlockSpec(pooled.shape, lambda i: (0, 0)),
            pl.BlockSpec(w1_flat.shape, lambda i: (0, 0)),
            pl.BlockSpec(w2_flat.shape, lambda i: (0, 0)),
        ],
        out_specs=pl.BlockSpec((B, C_out), lambda i: (0, 0)),
        compiler_params=pltpu.CompilerParams(vmem_limit_bytes=vmem_limit_bytes),
    )(pooled, w1_flat, w2_flat)

    # ---------- hot path: lane-dense, tiled, pipelined broadcast multiply ----------
    R, L = B * C_out, Hb * Wb
    itemsize = jnp.dtype(feat_big.dtype).itemsize
    unit_r = _sublane_unit(feat_big.dtype)

    xb2 = feat_big.reshape(R, L)          # rows = (b, c), lanes = (h, w); native dtype
    gate2 = gate.reshape(R, 1)            # per-row f32 gate

    # Pad to sublane/lane units instead of full-extent fallback tiles, so odd
    # spatial sizes can never blow past VMEM and stores stay unmasked vst's.
    R_pad, L_pad = _round_up(R, unit_r), _round_up(L, _LANE)
    padded = (R_pad, L_pad) != (R, L)
    if padded:
        xb2 = jnp.pad(xb2, ((0, R_pad - R), (0, L_pad - L)))
        gate2 = jnp.pad(gate2, ((0, R_pad - R), (0, 0)))

    tile_r, tile_l = _choose_tiles(R_pad, L_pad, unit_r, itemsize,
                                   row_tile_max, lane_tile_max)

    extra = {}
    if in_place:
        # Donate feat_big's buffer (same HBM traffic, half the footprint).
        extra["input_output_aliases"] = {1: 0}

    out2 = pl.pallas_call(
        _scale_kernel,
        out_shape=jax.ShapeDtypeStruct((R_pad, L_pad), feat_big.dtype),
        grid=(R_pad // tile_r, L_pad // tile_l),
        in_specs=[
            pl.BlockSpec((tile_r, 1), lambda i, j: (i, 0)),
            pl.BlockSpec((tile_r, tile_l), lambda i, j: (i, j)),
        ],
        out_specs=pl.BlockSpec((tile_r, tile_l), lambda i, j: (i, j)),
        compiler_params=pltpu.CompilerParams(
            dimension_semantics=("parallel", "parallel"),
            vmem_limit_bytes=vmem_limit_bytes),
        cost_estimate=pl.CostEstimate(
            flops=R_pad * L_pad,
            transcendentals=0,
            bytes_accessed=2 * R_pad * L_pad * itemsize + R_pad * 4),
        **extra,
    )(gate2, xb2)

    if padded:
        out2 = out2[:R, :L]
    return out2.reshape(B, C_out, Hb, Wb)


def spectral_normalize(w, n_iter=20):
    """Plain-JAX parameter setup mimicking torch spectral_norm (power iteration).
    # TODO(synk): torch uses a persistent-u single-step scheme; this converges to
    # the same sigma but can differ slightly from a mid-training checkpoint."""
    wm = w.reshape(w.shape[0], -1)
    u = jnp.full((wm.shape[0],), 1.0 / jnp.sqrt(wm.shape[0]), dtype=wm.dtype)
    for _ in range(n_iter):
        v = wm.T @ u
        v = v / (jnp.linalg.norm(v) + 1e-12)
        u = wm @ v
        u = u / (jnp.linalg.norm(u) + 1e-12)
    sigma = u @ (wm @ v)
    return w / sigma


if __name__ == "__main__":
    key = jax.random.PRNGKey(0)
    B, C_in, C_out = 2, 4, 8
    Hs = Ws = 16
    Hb = Wb = 32

    k1, k2, k3, k4 = jax.random.split(key, 4)
    feat_small = jax.random.normal(k1, (B, C_in, Hs, Ws), jnp.float32)
    feat_big = jax.random.normal(k2, (B, C_out, Hb, Wb), jnp.float32)

    # Deterministic synthetic conv weights (PyTorch shapes), spectrally normalized.
    w1 = jax.random.normal(k3, (C_out, C_in, 4, 4), jnp.float32) * 0.1
    w2 = jax.random.normal(k4, (C_out, C_out, 1, 1), jnp.float32) * 0.1
    w1 = spectral_normalize(w1)
    w2 = spectral_normalize(w2)

    out = jax.block_until_ready(se_block(feat_small, feat_big, w1, w2))

    # Pure-JAX reference for correctness.
    pooled_ref = feat_small.reshape(B, C_in, 4, Hs // 4, 4, Ws // 4).mean(axis=(3, 5))
    y1 = jnp.einsum("bcij,ocij->bo", pooled_ref, w1)
    y1 = y1 * jax.nn.sigmoid(y1)
    y2 = jnp.einsum("bc,oc->bo", y1, w2[:, :, 0, 0])
    ref = feat_big * jax.nn.sigmoid(y2)[:, :, None, None]
    assert out.shape == ref.shape
    assert jnp.allclose(out, ref, atol=1e-5, rtol=1e-5), "mismatch vs reference"

    print("KERNEL_OK")
</pallas_src>

<mosaic_0001>
module attributes {stable_mosaic.version = 11 : i64} {
  func.func @_gate_kernel(%arg0: i32, %arg1: memref<2x64xf32, #tpu.memory_space<vmem>>, %arg2: memref<64x8xf32, #tpu.memory_space<vmem>>, %arg3: memref<8x8xf32, #tpu.memory_space<vmem>>, %arg4: memref<2x8xf32, #tpu.memory_space<vmem>>) attributes {dimension_semantics = [#tpu.dimension_semantics<arbitrary>], iteration_bounds = array<i64: 1>, scalar_prefetch = 0 : i64, scratch_operands = 0 : i64, tpu.core_type = #tpu.core_type<tc>, window_params = [{pipeline_mode = #tpu.pipeline_mode<synchronous>, transform_indices = @transform_0, window_bounds = array<i64: 2, 64>}, {pipeline_mode = #tpu.pipeline_mode<synchronous>, transform_indices = @transform_1, window_bounds = array<i64: 64, 8>}, {pipeline_mode = #tpu.pipeline_mode<synchronous>, transform_indices = @transform_2, window_bounds = array<i64: 8, 8>}, {pipeline_mode = #tpu.pipeline_mode<synchronous>, transform_indices = @transform_3, window_bounds = array<i64: 2, 8>}]} {
    %c0 = arith.constant 0 : index
    %c0_0 = arith.constant 0 : index
    %0 = vector.load %arg1[%c0, %c0_0] : memref<2x64xf32, #tpu.memory_space<vmem>>, vector<2x64xf32>
    %c0_1 = arith.constant 0 : index
    %c0_2 = arith.constant 0 : index
    %1 = vector.load %arg2[%c0_1, %c0_2] : memref<64x8xf32, #tpu.memory_space<vmem>>, vector<64x8xf32>
    %cst = arith.constant dense<0.000000e+00> : vector<2x8xf32>
    %2 = tpu.matmul %0, %1, %cst {dimension_numbers = #tpu.dot_dimension_numbers<[1], [0], [0], [1], [0, 0, 1, 1], [], []>} : vector<2x64xf32>, vector<64x8xf32>, vector<2x8xf32> -> vector<2x8xf32>
    %3 = arith.negf %2 : vector<2x8xf32>
    %4 = math.exp %3 : vector<2x8xf32>
    %cst_3 = arith.constant 1.000000e+00 : f32
    %5 = vector.broadcast %cst_3 : f32 to vector<2x8xf32>
    %6 = arith.addf %5, %4 : vector<2x8xf32>
    %7 = arith.divf %5, %6 : vector<2x8xf32>
    %8 = arith.mulf %2, %7 : vector<2x8xf32>
    %c0_4 = arith.constant 0 : index
    %c0_5 = arith.constant 0 : index
    %9 = vector.load %arg3[%c0_4, %c0_5] : memref<8x8xf32, #tpu.memory_space<vmem>>, vector<8x8xf32>
    %cst_6 = arith.constant dense<0.000000e+00> : vector<2x8xf32>
    %10 = tpu.matmul %8, %9, %cst_6 {dimension_numbers = #tpu.dot_dimension_numbers<[1], [0], [0], [1], [0, 0, 1, 1], [], []>} : vector<2x8xf32>, vector<8x8xf32>, vector<2x8xf32> -> vector<2x8xf32>
    %11 = arith.negf %10 : vector<2x8xf32>
    %12 = math.exp %11 : vector<2x8xf32>
    %cst_7 = arith.constant 1.000000e+00 : f32
    %13 = vector.broadcast %cst_7 : f32 to vector<2x8xf32>
    %14 = arith.addf %13, %12 : vector<2x8xf32>
    %15 = arith.divf %13, %14 : vector<2x8xf32>
    %c0_8 = arith.constant 0 : index
    %c0_9 = arith.constant 0 : index
    %16 = vector.load %arg4[%c0_8, %c0_9] : memref<2x8xf32, #tpu.memory_space<vmem>>, vector<2x8xf32>
    tpu.vector_store %arg4[%c0_8, %c0_9], %15 {strides = array<i32>} : memref<2x8xf32, #tpu.memory_space<vmem>>, vector<2x8xf32>,
    return
  }
  func.func @transform_0(%arg0: i32) -> (i32, i32) {
    %c0_i32 = arith.constant 0 : i32
    %c0_i32_0 = arith.constant 0 : i32
    %c0_i32_1 = arith.constant 0 : i32
    return %c0_i32, %c0_i32_0 : i32, i32
  }
  func.func @transform_1(%arg0: i32) -> (i32, i32) {
    %c0_i32 = arith.constant 0 : i32
    %c0_i32_0 = arith.constant 0 : i32
    %c0_i32_1 = arith.constant 0 : i32
    return %c0_i32, %c0_i32_0 : i32, i32
  }
  func.func @transform_2(%arg0: i32) -> (i32, i32) {
    %c0_i32 = arith.constant 0 : i32
    %c0_i32_0 = arith.constant 0 : i32
    %c0_i32_1 = arith.constant 0 : i32
    return %c0_i32, %c0_i32_0 : i32, i32
  }
  func.func @transform_3(%arg0: i32) -> (i32, i32) {
    %c0_i32 = arith.constant 0 : i32
    %c0_i32_0 = arith.constant 0 : i32
    %c0_i32_1 = arith.constant 0 : i32
    return %c0_i32, %c0_i32_0 : i32, i32
  }
}

</mosaic_0001>

<bundles_post_ra>
// kernel: tpu_custom_call.1
= control target key start
LH: loop header
LB: loop body
LE: loop exit
PB: predicated region body
PF: predicated region fallthrough
CT: control target
= control target key end

     0   :  { %v289_v3 = vmov 0.0|0.0   ;;  %vm290_vm0 = vmmov 0   ;;  %v291_v6 = vmov 0.0   ;;  %s355_s0 = inlined_call_operand.vmem [shape: f32[2,64], index: 0, kind: input, shape index: {}]   ;;  %s356_s1 = inlined_call_operand.vmem [shape: f32[64,8], index: 1, kind: input, shape index: {}]   ;;  %s357_s2 = inlined_call_operand.vmem [shape: f32[8,8], index: 2, kind: input, shape index: {}]   ;;  %s358_s3 = inlined_call_operand.hbm [shape: f32[2,8], index: 3, kind: output, shape index: {}]  }
   0x1   :  { %v16_v0 = vld [vmem:[%s356_s1] sm:$0xff]  ;;  %v17_v1 = vld [vmem:[%s356_s1 + $0x8] sm:$0xff]  ;;  %v18_v2 = vld [vmem:[%s356_s1 + $0x10] sm:$0xff]  ;;  %241 = vmatprep.subr.bf16.mxu0 %v289_v3  ;;  %233 = vmatprep.mubr.msk.f32.mxu0 %vm290_vm0, %v291_v6 }
   0x2   :  { %v242_v4 = vpack.c.bf16 %v17_v1, %v16_v0  ;;  %v19_v5 = vld [vmem:[%s356_s1 + $0x18] sm:$0xff]  ;;  %236 = vmatprep.subr.mxu1 %v291_v6  ;;  %238 = vmatprep.mubr.msk.f32.mxu1 %vm290_vm0, %v291_v6 }
   0x3   :  { %v245_v7 = vpack.c.bf16 %v19_v5, %v18_v2 }
   0x4   :  { %243 = vmatpush3.bf16.msra.mxu0 %v242_v4 }
   0x5   :  { %8 = vsyncpa [#allocation3], 0  ;;  %244 = vmatprep.subr.bf16.mxu0 %v289_v3  ;;  %v20_v8 = vld [vmem:[%s356_s1 + $0x20] sm:$0xff]  ;;  %v21_v9 = vld [vmem:[%s356_s1 + $0x28] sm:$0xff]  ;;  %vm24_vm1 = vcmask 523264   ;;  %vm106_vm2 = vcmask 64512  }
   0x6   :  { %v248_v10 = vpack.c.bf16 %v21_v9, %v20_v8  ;;  %v22_v11 = vld [vmem:[%s356_s1 + $0x30] sm:$0xff]  ;;  %v23_v12 = vld [vmem:[%s356_s1 + $0x38] sm:$0xff]  ;;  %v15_v14 = vld [vmem:[%s355_s0] sm:$0x3]  ;;  %s292_s0 = smov [#allocation2]   ;;  %vm186_vm3 = vcmask 58368  }
   0x7   :  { %v251_v13 = vpack.c.bf16 %v23_v12, %v22_v11  ;;  %v105_v15 = vld [vmem:[%s357_s2] sm:$0xff]  ;;  %s194_s1 = sshll.u32 %s292_s0, 4  ;;  %s195_s1 = int_to_ptr.vmem [resolvable:$true] %s194_s1 }
   0x8   :  { %246 = vmatpush3.bf16.msra.mxu0 %v245_v7  ;;  %237 = vmatpush3.msra.mxu1 %v105_v15  ;;  %s265_s2 = scalar_lea.vmem %s195_s1, 32  ;;  %p270_p1 = scmp.lt.s32.totalorder %s195_s1, %s195_s1 }
   0x9   :  { %247 = vmatprep.subr.bf16.mxu0 %v289_v3  ;;  %p266_p0 = scmp.ne.s32.totalorder %s195_s1, %s265_s2  ;;  %p271_p2 = scmp.lt.s32.totalorder %s265_s2, %s265_s2 }
   0xb   :  { %p272_p3 = por %p271_p2, %p270_p1 }
   0xc   :  { %249 = vmatpush3.bf16.msra.mxu0 %v248_v10 }
   0xd   :  { %250 = vmatprep.subr.bf16.mxu0 %v289_v3  ;;  %p273_p4 = pnand %p272_p3, %p266_p0 }
  0x10   :  { %252 = vmatpush3.bf16.msra.mxu0 %v251_v13 }
  0x13   :  { %234 = vmatmul.mubr.msk.f32.vlgmr.msra.gmra.mrb[0].mxu0 %vm24_vm1, %v15_v14 }
  0xe6   :  { %v94_v16 = vpop.f32.mrb[0].mxu0 }
  0xe7   :  { %v203_v17 = vmul.f32 -1.442695, %v94_v16  ;;  %v235_v18 = vpop.f32.mrb[1].mxu0 }
  0xe9   :  { %257 = vpow2.f32 %v203_v17 }
  0xf3   :  { %v258_v19 = vpop.eup %257 }
  0xf4   :  { %v101_v20 = vadd.f32 1.0, %v258_v19 }
  0xf6   :  { %259 = vrcp.f32 %v101_v20 }
 0x100   :  { %v260_v21 = vpop.eup %259 }
 0x101   :  { %v104_v22 = vmul.f32 %v260_v21, %v94_v16 }
 0x103   :  { %239 = vmatmul.mubr.msk.f32.vlgmr.msra.gmra.mrb[0].mxu1 %vm106_vm2, %v104_v22 }
 0x1d6   :  { %v176_v23 = vpop.f32.mrb[0].mxu1 }
 0x1d7   :  { %v205_v24 = vmul.f32 -1.442695, %v176_v23  ;;  %v240_v25 = vpop.f32.mrb[1].mxu1 }
 0x1d9   :  { %261 = vpow2.f32 %v205_v24 }
 0x1e3   :  { %v262_v26 = vpop.eup %261 }
 0x1e4   :  { %v183_v27 = vadd.f32 1.0, %v262_v26 }
 0x1e6   :  { %263 = vrcp.f32 %v183_v27 }
 0x1f0   :  { %v264_v28 = vpop.eup %263 }
 0x1f1   :  { %187 = vst.msk [vmem:[#allocation2] sm:$0x3] %vm186_vm3, %v264_v28 }
 0x1f2   :  { %276 = shalt.err (!%p273_p4)
}
 0x1f3   :  { %s277_s7 = scalar_lea.hbm %s358_s3, 32 }
 0x1f4   :  { %p278_p5 = scmp.ne.s32.totalorder %s358_s3, %s277_s7  ;;  %p281_p6 = scmp.lt.u32.totalorder %s277_s7, %s358_s3 }
 0x1f6   :  { %p283_p7 = pnand %p281_p6, %p278_p5 }
 0x1f8   :  { %286 = shalt.err (!%p283_p7)
}
 0x1f9   :  { %197 = dma.vmem_to_hbm [thread:$0]  %s195_s1, 32, %s358_s3, [#allocation3]  }
 0x1fa   :  { %287 = dma.done.wait [#allocation3], 32  }
 0x1fb   :  { %288 = vsyncadd [#allocation3], 4294967264 }
 0x1fc   :  { %201 = vsyncpa [#allocation3], 1 }

</bundles_post_ra>
